<compile_context>
chip_gen: v7x
topology: tpu7x:2x2x1
jax: 0.10.0
libtpu: 0.0.40
codegen_flags: <defaults>
</compile_context>

<pallas_src>
import jax
import jax.numpy as jnp
from jax.experimental import pallas as pl
from jax.experimental.pallas import tpu as pltpu


def classifier_kernel(x_ref, w1_ref, b1_ref, w2_ref, b2_ref, o_ref):
    # fc1: [tm, D_in] @ [D_in, H]  (bf16 operands, f32 accumulation on MXU)
    h = jnp.dot(x_ref[...].astype(jnp.bfloat16),
                w1_ref[...].astype(jnp.bfloat16),
                preferred_element_type=jnp.float32)
    h = h + b1_ref[...]            # f32 bias add (VPU), (1,H) broadcasts over rows
    h = jnp.maximum(h, 0.0)        # ReLU in f32 (VPU)
    # dropout: eval-mode identity.
    # TODO(synk): training-mode dropout would need pltpu.prng_seed/prng_random_bits.
    # fc2: [tm, H] @ [H, C]  (bf16 operands, f32 accumulation on MXU)
    out = jnp.dot(h.astype(jnp.bfloat16),
                  w2_ref[...].astype(jnp.bfloat16),
                  preferred_element_type=jnp.float32)
    out = out + b2_ref[...]        # f32 bias add, (1,C) broadcasts over rows
    o_ref[...] = out.astype(o_ref.dtype)


def _round_up(v, m):
    return ((v + m - 1) // m) * m


def custom_classifier(x, w1, b1, w2, b2, *, tm=None):
    """x: [B, D_in] f32; w1: [D_in, H]; b1: [H]; w2: [H, C]; b2: [C] -> [B, C] f32."""
    B, D_in = x.shape
    H = w1.shape[1]
    C = w2.shape[1]

    if tm is None:
        # Single big tile for single-TC chips (v5e/v6e); cap it for huge batches.
        # On v7x, pass tm = _round_up(pl.cdiv(B, 2), 8) to put one tile per core.
        tm = min(_round_up(B, 8), 1024)

    # Metadata-only reshapes so biases are 2-D lane vectors in VMEM.
    b1r = b1.reshape(1, H)
    b2r = b2.reshape(1, C)

    grid = (pl.cdiv(B, tm),)

    itemsize = x.dtype.itemsize
    cost = pl.CostEstimate(
        flops=2 * B * (D_in * H + H * C),
        transcendentals=0,
        bytes_accessed=(
            x.size * itemsize
            + w1.size * w1.dtype.itemsize
            + b1.size * b1.dtype.itemsize
            + w2.size * w2.dtype.itemsize
            + b2.size * b2.dtype.itemsize
            + B * C * 4
        ),
    )

    return pl.pallas_call(
        classifier_kernel,
        out_shape=jax.ShapeDtypeStruct((B, C), jnp.float32),
        grid=grid,
        in_specs=[
            # x: streamed row tile per grid step (Pallas masks the edge block).
            pl.BlockSpec((tm, D_in), lambda i: (i, 0)),
            # weights / biases: full-array blocks, constant index_map -> stay
            # VMEM-resident across all batch tiles (no re-DMA).
            pl.BlockSpec((D_in, H), lambda i: (0, 0)),
            pl.BlockSpec((1, H), lambda i: (0, 0)),
            pl.BlockSpec((H, C), lambda i: (0, 0)),
            pl.BlockSpec((1, C), lambda i: (0, 0)),
        ],
        # Unpadded output: last block dim C equals the full array dim, so the
        # (8,128) rule is satisfied and there is no padded writeback / slice.
        out_specs=pl.BlockSpec((tm, C), lambda i: (i, 0)),
        compiler_params=pltpu.CompilerParams(
            dimension_semantics=("parallel",),
        ),
        cost_estimate=cost,
    )(x, w1, b1r, w2, b2r)


if __name__ == "__main__":
    # Module config: hidden_dim=32 (nonzero branch), num_class=8,
    # activation_fun=ReLU, dropout_rate=0.1 (identity at inference).
    B, D_in, H, C = 64, 32, 32, 8

    key = jax.random.PRNGKey(0)
    k_x, k_w1, k_b1, k_w2, k_b2 = jax.random.split(key, 5)

    x = jax.random.normal(k_x, (B, D_in), dtype=jnp.float32)
    # PyTorch-style uniform init bounds.
    w1 = jax.random.uniform(k_w1, (D_in, H), jnp.float32,
                            -1.0 / jnp.sqrt(D_in), 1.0 / jnp.sqrt(D_in))
    b1 = jax.random.uniform(k_b1, (H,), jnp.float32,
                            -1.0 / jnp.sqrt(D_in), 1.0 / jnp.sqrt(D_in))
    w2 = jax.random.uniform(k_w2, (H, C), jnp.float32,
                            -1.0 / jnp.sqrt(H), 1.0 / jnp.sqrt(H))
    b2 = jax.random.uniform(k_b2, (C,), jnp.float32,
                            -1.0 / jnp.sqrt(H), 1.0 / jnp.sqrt(H))

    out = custom_classifier(x, w1, b1, w2, b2)
    out = jax.block_until_ready(out)
    assert out.shape == (B, C)

    # Reference 1: same bf16-operand / f32-accumulate compute path (tight check).
    h_ref = jnp.maximum(
        jnp.dot(x.astype(jnp.bfloat16), w1.astype(jnp.bfloat16),
                preferred_element_type=jnp.float32) + b1, 0.0)
    ref_bf16 = jnp.dot(h_ref.astype(jnp.bfloat16), w2.astype(jnp.bfloat16),
                       preferred_element_type=jnp.float32) + b2
    assert jnp.allclose(out, ref_bf16, atol=1e-4, rtol=1e-4)

    # Reference 2: full-f32 forward semantics of the PyTorch module (loose check,
    # accounts for deliberate bf16 matmul operands).
    ref_f32 = jnp.maximum(x @ w1 + b1, 0.0) @ w2 + b2
    assert jnp.allclose(out, ref_f32, atol=5e-2, rtol=5e-2)

    print("KERNEL_OK")
</pallas_src>

<mosaic_0001>
module attributes {stable_mosaic.version = 11 : i64} {
  func.func @classifier_kernel(%arg0: i32, %arg1: memref<64x32xf32, #tpu.memory_space<vmem>>, %arg2: memref<32x32xf32, #tpu.memory_space<vmem>>, %arg3: memref<1x32xf32, #tpu.memory_space<vmem>>, %arg4: memref<32x8xf32, #tpu.memory_space<vmem>>, %arg5: memref<1x8xf32, #tpu.memory_space<vmem>>, %arg6: memref<64x8xf32, #tpu.memory_space<vmem>>) attributes {dimension_semantics = [#tpu.dimension_semantics<parallel>], iteration_bounds = array<i64: 1>, scalar_prefetch = 0 : i64, scratch_operands = 0 : i64, tpu.core_type = #tpu.core_type<tc>, window_params = [{transform_indices = @transform_0, window_bounds = array<i64: 64, 32>}, {pipeline_mode = #tpu.pipeline_mode<synchronous>, transform_indices = @transform_1, window_bounds = array<i64: 32, 32>}, {pipeline_mode = #tpu.pipeline_mode<synchronous>, transform_indices = @transform_2, window_bounds = array<i64: 1, 32>}, {pipeline_mode = #tpu.pipeline_mode<synchronous>, transform_indices = @transform_3, window_bounds = array<i64: 32, 8>}, {pipeline_mode = #tpu.pipeline_mode<synchronous>, transform_indices = @transform_4, window_bounds = array<i64: 1, 8>}, {transform_indices = @transform_5, window_bounds = array<i64: 64, 8>}]} {
    %c0 = arith.constant 0 : index
    %c0_0 = arith.constant 0 : index
    %0 = vector.load %arg1[%c0, %c0_0] : memref<64x32xf32, #tpu.memory_space<vmem>>, vector<64x32xf32>
    %1 = arith.truncf %0 : vector<64x32xf32> to vector<64x32xbf16>
    %c0_1 = arith.constant 0 : index
    %c0_2 = arith.constant 0 : index
    %2 = vector.load %arg2[%c0_1, %c0_2] : memref<32x32xf32, #tpu.memory_space<vmem>>, vector<32x32xf32>
    %3 = arith.truncf %2 : vector<32x32xf32> to vector<32x32xbf16>
    %cst = arith.constant dense<0.000000e+00> : vector<64x32xf32>
    %4 = tpu.matmul %1, %3, %cst {dimension_numbers = #tpu.dot_dimension_numbers<[1], [0], [0], [1], [0, 0, 1, 1], [], []>} : vector<64x32xbf16>, vector<32x32xbf16>, vector<64x32xf32> -> vector<64x32xf32>
    %c0_3 = arith.constant 0 : index
    %c0_4 = arith.constant 0 : index
    %5 = vector.load %arg3[%c0_3, %c0_4] : memref<1x32xf32, #tpu.memory_space<vmem>>, vector<1x32xf32>
    %6 = vector.broadcast %5 : vector<1x32xf32> to vector<64x32xf32>
    %7 = arith.addf %4, %6 : vector<64x32xf32>
    %cst_5 = arith.constant 0.000000e+00 : f32
    %8 = vector.broadcast %cst_5 : f32 to vector<64x32xf32>
    %9 = arith.maximumf %7, %8 : vector<64x32xf32>
    %10 = arith.truncf %9 : vector<64x32xf32> to vector<64x32xbf16>
    %c0_6 = arith.constant 0 : index
    %c0_7 = arith.constant 0 : index
    %11 = vector.load %arg4[%c0_6, %c0_7] : memref<32x8xf32, #tpu.memory_space<vmem>>, vector<32x8xf32>
    %12 = arith.truncf %11 : vector<32x8xf32> to vector<32x8xbf16>
    %cst_8 = arith.constant dense<0.000000e+00> : vector<64x8xf32>
    %13 = tpu.matmul %10, %12, %cst_8 {dimension_numbers = #tpu.dot_dimension_numbers<[1], [0], [0], [1], [0, 0, 1, 1], [], []>} : vector<64x32xbf16>, vector<32x8xbf16>, vector<64x8xf32> -> vector<64x8xf32>
    %c0_9 = arith.constant 0 : index
    %c0_10 = arith.constant 0 : index
    %14 = vector.load %arg5[%c0_9, %c0_10] : memref<1x8xf32, #tpu.memory_space<vmem>>, vector<1x8xf32>
    %15 = vector.broadcast %14 : vector<1x8xf32> to vector<64x8xf32>
    %16 = arith.addf %13, %15 : vector<64x8xf32>
    %c0_11 = arith.constant 0 : index
    %c0_12 = arith.constant 0 : index
    %17 = vector.load %arg6[%c0_11, %c0_12] : memref<64x8xf32, #tpu.memory_space<vmem>>, vector<64x8xf32>
    tpu.vector_store %arg6[%c0_11, %c0_12], %16 {strides = array<i32>} : memref<64x8xf32, #tpu.memory_space<vmem>>, vector<64x8xf32>,
    return
  }
  func.func @transform_0(%arg0: i32) -> (i32, i32) {
    %c0_i32 = arith.constant 0 : i32
    %c0_i32_0 = arith.constant 0 : i32
    return %arg0, %c0_i32 : i32, i32
  }
  func.func @transform_1(%arg0: i32) -> (i32, i32) {
    %c0_i32 = arith.constant 0 : i32
    %c0_i32_0 = arith.constant 0 : i32
    %c0_i32_1 = arith.constant 0 : i32
    return %c0_i32, %c0_i32_0 : i32, i32
  }
  func.func @transform_2(%arg0: i32) -> (i32, i32) {
    %c0_i32 = arith.constant 0 : i32
    %c0_i32_0 = arith.constant 0 : i32
    %c0_i32_1 = arith.constant 0 : i32
    return %c0_i32, %c0_i32_0 : i32, i32
  }
  func.func @transform_3(%arg0: i32) -> (i32, i32) {
    %c0_i32 = arith.constant 0 : i32
    %c0_i32_0 = arith.constant 0 : i32
    %c0_i32_1 = arith.constant 0 : i32
    return %c0_i32, %c0_i32_0 : i32, i32
  }
  func.func @transform_4(%arg0: i32) -> (i32, i32) {
    %c0_i32 = arith.constant 0 : i32
    %c0_i32_0 = arith.constant 0 : i32
    %c0_i32_1 = arith.constant 0 : i32
    return %c0_i32, %c0_i32_0 : i32, i32
  }
  func.func @transform_5(%arg0: i32) -> (i32, i32) {
    %c0_i32 = arith.constant 0 : i32
    %c0_i32_0 = arith.constant 0 : i32
    return %arg0, %c0_i32 : i32, i32
  }
}

</mosaic_0001>

<bundles_post_ra>
// kernel: tpu_custom_call.1
= control target key start
LH: loop header
LB: loop body
LE: loop exit
PB: predicated region body
PF: predicated region fallthrough
CT: control target
= control target key end

     0   :  { %vm46_vm0 = vcmask 261120   ;;  %vm226_vm1 = vcmask 64512   ;;  %s409_s1 = inlined_call_operand.vmem [shape: f32[32,32], index: 1, kind: input, shape index: {}]   ;;  %s410_s0 = inlined_call_operand.vmem [shape: f32[64,32], index: 0, kind: input, shape index: {}]   ;;  %s411_s3 = inlined_call_operand.vmem [shape: f32[32,8], index: 3, kind: input, shape index: {}]   ;;  %s412_s2 = inlined_call_operand.vmem [shape: f32[1,32], index: 2, kind: input, shape index: {}]   ;;  %s413_s4 = inlined_call_operand.vmem [shape: f32[1,8], index: 4, kind: input, shape index: {}]   ;;  %s414_s5 = inlined_call_operand.vmem [shape: f32[64,8], index: 5, kind: output, shape index: {}]  }
   0x1   :  { %v33_v0 = vld [vmem:[%s409_s1] sm:$0xff]  ;;  %v34_v1 = vld [vmem:[%s409_s1 + $0x8] sm:$0xff]  ;;  %v35_v2 = vld [vmem:[%s409_s1 + $0x10] sm:$0xff] }
   0x2   :  { %v37_v3 = vpack.c.bf16 %v34_v1, %v33_v0  ;;  %v36_v4 = vld [vmem:[%s409_s1 + $0x18] sm:$0xff]  ;;  %v21_v5 = vld [vmem:[%s410_s0] sm:$0xff]  ;;  %v22_v6 = vld [vmem:[%s410_s0 + $0x8] sm:$0xff] }
   0x3   :  { %v38_v7 = vpack.c.bf16 %v36_v4, %v35_v2  ;;  %v29_v8 = vpack.c.bf16 %v22_v6, %v21_v5  ;;  %v23_v9 = vld [vmem:[%s410_s0 + $0x10] sm:$0xff]  ;;  %v24_v10 = vld [vmem:[%s410_s0 + $0x18] sm:$0xff]  ;;  %v25_v11 = vld [vmem:[%s410_s0 + $0x20] sm:$0xff] }
   0x4   :  { %261 = vmatprep.subr.bf16.mxu0 %v37_v3  ;;  %v26_v12 = vld [vmem:[%s410_s0 + $0x28] sm:$0xff]  ;;  %v30_v13 = vpack.c.bf16 %v24_v10, %v23_v9  ;;  %v27_v15 = vld [vmem:[%s410_s0 + $0x30] sm:$0xff]  ;;  %v28_v16 = vld [vmem:[%s410_s0 + $0x38] sm:$0xff] }
   0x5   :  { %262 = vmatpush3.bf16.msra.mxu0 %v37_v3  ;;  %265 = vmatprep.mubr.msk.bf16.mxu0 %vm46_vm0, %v29_v8  ;;  %v31_v14 = vpack.c.bf16 %v26_v12, %v25_v11  ;;  %v32_v17 = vpack.c.bf16 %v28_v16, %v27_v15  ;;  %v136_v18 = vld [vmem:[%s411_s3] sm:$0xff]  ;;  %v137_v19 = vld [vmem:[%s411_s3 + $0x8] sm:$0xff]  ;;  %v138_v21 = vld [vmem:[%s411_s3 + $0x10] sm:$0xff] }
   0x6   :  { %263 = vmatprep.subr.bf16.mxu0 %v38_v7  ;;  %v140_v20 = vpack.c.bf16 %v137_v19, %v136_v18  ;;  %v139_v22 = vld [vmem:[%s411_s3 + $0x18] sm:$0xff]  ;;  %v239_v24 = vld [vmem:[%s412_s2] ss:$0 sm:$0xff] }
   0x7   :  { %v141_v23 = vpack.c.bf16 %v139_v22, %v138_v21  ;;  %v244_v53 = vld [vmem:[%s413_s4] ss:$0 sm:$0xff] }
   0x8   :  { %273 = vmatprep.subr.bf16.mxu1 %v140_v20 }
   0x9   :  { %264 = vmatpush3.bf16.msra.mxu0 %v38_v7  ;;  %274 = vmatpush3.bf16.msra.mxu1 %v140_v20 }
   0xa   :  { %275 = vmatprep.subr.bf16.mxu1 %v141_v23 }
   0xc   :  { %266 = vmatmul.mubr.msk.bf16.vlgmr.msra.gmra.mrb[0].mxu0 %vm46_vm0, %v30_v13 }
   0xd   :  { %269 = vmatprep.mubr.msk.bf16.mxu0 %vm46_vm0, %v31_v14  ;;  %276 = vmatpush3.bf16.msra.mxu1 %v141_v23 }
  0x14   :  { %270 = vmatmul.mubr.msk.bf16.gmra.mrb[4].mxu0 %vm46_vm0, %v32_v17 }
  0xdf   :  { %v267_v25 = vpop.f32.mrb[0].mxu0 }
  0xe0   :  { %v102_v26 = vadd.f32 %v267_v25, %v239_v24  ;;  %v93_v27 = vpop.f32.mrb[1].mxu0 }
  0xe1   :  { %v94_v28 = vadd.f32 %v239_v24, %v93_v27  ;;  %v268_v29 = vpop.f32.mrb[2].mxu0 }
  0xe2   :  { %v105_v30 = vadd.f32 %v268_v29, %v239_v24  ;;  %v96_v31 = vpop.f32.mrb[3].mxu0  ;;  %v126_v33 = vmax.f32 %v102_v26, 0.0 }
  0xe3   :  { %v97_v32 = vadd.f32 %v239_v24, %v96_v31  ;;  %v124_v35 = vmax.f32 %v94_v28, 0.0 }
  0xe4   :  { %v127_v34 = vmax.f32 %v105_v30, 0.0 }
  0xe5   :  { %v125_v36 = vmax.f32 %v97_v32, 0.0 }
  0xe6   :  { %v133_v37 = vpack.c.bf16 %v127_v34, %v126_v33 }
  0xe7   :  { %v271_v38 = vpop.f32.mrb[4].mxu0  ;;  %v132_v39 = vpack.c.bf16 %v125_v36, %v124_v35 }
  0xe8   :  { %v118_v40 = vadd.f32 %v271_v38, %v239_v24  ;;  %v109_v41 = vpop.f32.mrb[5].mxu0 }
  0xe9   :  { %v110_v42 = vadd.f32 %v239_v24, %v109_v41  ;;  %v272_v43 = vpop.f32.mrb[6].mxu0  ;;  %277 = vmatprep.mubr.msk.bf16.mxu1 %vm46_vm0, %v132_v39 }
  0xea   :  { %v121_v44 = vadd.f32 %v272_v43, %v239_v24  ;;  %v112_v45 = vpop.f32.mrb[7].mxu0  ;;  %278 = vmatmul.mubr.msk.bf16.vlgmr.msra.gmra.mrb[0].mxu1 %vm46_vm0, %v133_v37  ;;  %v130_v47 = vmax.f32 %v118_v40, 0.0 }
  0xeb   :  { %v113_v46 = vadd.f32 %v239_v24, %v112_v45  ;;  %v128_v49 = vmax.f32 %v110_v42, 0.0 }
  0xec   :  { %v131_v48 = vmax.f32 %v121_v44, 0.0 }
  0xed   :  { %v129_v50 = vmax.f32 %v113_v46, 0.0 }
  0xee   :  { %v135_v51 = vpack.c.bf16 %v131_v48, %v130_v47 }
  0xef   :  { %v134_v52 = vpack.c.bf16 %v129_v50, %v128_v49 }
  0xf1   :  { %281 = vmatprep.mubr.msk.bf16.mxu1 %vm46_vm0, %v134_v52 }
  0xf2   :  { %282 = vmatmul.mubr.msk.bf16.gmra.mrb[4].mxu1 %vm46_vm0, %v135_v51 }
 0x1bd   :  { %v279_v54 = vpop.f32.mrb[0].mxu1 }
 0x1be   :  { %v204_v55 = vadd.f32 %v279_v54, %v244_v53  ;;  %v195_v56 = vpop.f32.mrb[1].mxu1 }
 0x1bf   :  { %v196_v57 = vadd.f32 %v244_v53, %v195_v56  ;;  %v280_v58 = vpop.f32.mrb[2].mxu1 }
 0x1c0   :  { %229 = vst.msk [vmem:[%s414_s5 + $0x10] sm:$0xff] %vm226_vm1, %v204_v55  ;;  %v207_v59 = vadd.f32 %v280_v58, %v244_v53  ;;  %v198_v60 = vpop.f32.mrb[3].mxu1 }
 0x1c1   :  { %227 = vst.msk [vmem:[%s414_s5] sm:$0xff] %vm226_vm1, %v196_v57  ;;  %v199_v61 = vadd.f32 %v244_v53, %v198_v60 }
 0x1c2   :  { %230 = vst.msk [vmem:[%s414_s5 + $0x18] sm:$0xff] %vm226_vm1, %v207_v59 }
 0x1c3   :  { %228 = vst.msk [vmem:[%s414_s5 + $0x8] sm:$0xff] %vm226_vm1, %v199_v61 }
 0x1c5   :  { %v283_v62 = vpop.f32.mrb[4].mxu1 }
 0x1c6   :  { %v220_v63 = vadd.f32 %v283_v62, %v244_v53  ;;  %v211_v0 = vpop.f32.mrb[5].mxu1 }
 0x1c7   :  { %v212_v1 = vadd.f32 %v244_v53, %v211_v0  ;;  %v284_v2 = vpop.f32.mrb[6].mxu1 }
 0x1c8   :  { %233 = vst.msk [vmem:[%s414_s5 + $0x30] sm:$0xff] %vm226_vm1, %v220_v63  ;;  %v223_v3 = vadd.f32 %v284_v2, %v244_v53  ;;  %v214_v4 = vpop.f32.mrb[7].mxu1 }
 0x1c9   :  { %231 = vst.msk [vmem:[%s414_s5 + $0x20] sm:$0xff] %vm226_vm1, %v212_v1  ;;  %v215_v5 = vadd.f32 %v244_v53, %v214_v4 }
 0x1ca   :  { %234 = vst.msk [vmem:[%s414_s5 + $0x38] sm:$0xff] %vm226_vm1, %v223_v3 }
 0x1cb   :  { %232 = vst.msk [vmem:[%s414_s5 + $0x28] sm:$0xff] %vm226_vm1, %v215_v5 }

</bundles_post_ra>
